<compile_context>
chip_gen: v7x
topology: tpu7x:2x2x1
jax: 0.10.0
libtpu: 0.0.40
codegen_flags: <defaults>
</compile_context>

<pallas_src>
import functools

import jax
import jax.numpy as jnp
from jax.experimental import pallas as pl
from jax.experimental.pallas import tpu as pltpu

_OUT_LANES = 128  # lane-dense output width


def _lstm_head_kernel(x_ref, wih_ref, whh_ref, b_ref, wfc_ref, bfc_ref,
                      out_ref, *, seq_len, batch_pad, hidden_dim):
    """Single invocation: whole LSTM recurrence + ReLU + Linear head."""
    H = hidden_dim
    Bp = batch_pad

    # (1) Hoisted input projection: one (T*Bp, D) @ (D, 4H) MXU matmul with the
    #     bias folded in.  Result stays in vregs (no scratch round trip).
    xw = (jnp.dot(x_ref[...], wih_ref[...],
                  preferred_element_type=jnp.float32)
          + b_ref[...])                                       # (T*Bp, 4H) f32

    whh = whh_ref[...]            # (H, 4H), loaded once, vreg-resident

    h = jnp.zeros((Bp, H), jnp.float32)
    c = jnp.zeros((Bp, H), jnp.float32)

    # (2) Recurrence: static unroll (T is a compile-time constant here), so
    #     every xw slice is a static vreg pick and h/c live in vregs.
    for t in range(seq_len):
        gates = xw[t * Bp:(t + 1) * Bp, :] + jnp.dot(
            h.astype(whh.dtype), whh,
            preferred_element_type=jnp.float32)               # (Bp, 4H) f32
        # PyTorch gate order [i, f, g, o].  One full-vreg sigmoid for all
        # gates; g-gate columns were pre-scaled by 2 in the wrapper so
        # tanh(pre_g) == 2*sigmoid(2*pre_g) - 1 exactly.
        sig = jax.nn.sigmoid(gates)                           # 1 EUP op
        i_g = sig[:, 0 * H:1 * H]
        f_g = sig[:, 1 * H:2 * H]
        g_g = 2.0 * sig[:, 2 * H:3 * H] - 1.0                 # == tanh(pre_g)
        o_g = sig[:, 3 * H:4 * H]
        c = f_g * c + i_g * g_g
        h = o_g * jnp.tanh(c)                                 # 1 EUP op

    # (3) Head: ReLU -> Linear(H, 1) as a lane reduction (no lane-1 MXU
    #     matmul), stored lane-dense (broadcast across 128 lanes).
    h_relu = jnp.maximum(h, 0.0)                              # (Bp, H)
    out_col = (jnp.sum(h_relu * wfc_ref[...], axis=-1, keepdims=True)
               + bfc_ref[...])                                # (Bp, 1)
    out_ref[...] = jnp.broadcast_to(out_col, (Bp, _OUT_LANES))


def multi_route_rnn_forward(x, params, *, matmul_dtype=jnp.float32):
    """x: (B, T, D) float32, batch-first like the PyTorch module.

    matmul_dtype: dtype of the MXU operands (x, W_ih^T, W_hh^T, h).  Use
    jnp.bfloat16 on v6e/v7x for faster MXU passes; accumulation and all
    elementwise math stay float32.
    """
    B, T, D = x.shape
    H = params["w_hh"].shape[1]
    Bp = max(8, -(-B // 8) * 8)  # pad batch to a multiple of 8 sublanes

    # time-major, batch-padded, flattened to (T*Bp, D) so the hoisted
    # projection is a single dense matmul inside the kernel.
    # (For large x, express this via BlockSpec/index_map instead of an XLA
    #  copy; at these sizes x is a few KiB so the copy is irrelevant.)
    x_tm = jnp.transpose(x, (1, 0, 2))                           # (T, B, D)
    x_tm = jnp.pad(x_tm, ((0, 0), (0, Bp - B), (0, 0)))          # (T, Bp, D)
    x2d = x_tm.reshape(T * Bp, D).astype(matmul_dtype)

    # Pre-scale the g-gate column block (2H:3H) by 2 so the kernel can use
    # tanh(x) = 2*sigmoid(2x) - 1 with a single full-vreg sigmoid.
    gate_scale = jnp.concatenate(
        [jnp.ones((1, 2 * H), jnp.float32),
         jnp.full((1, H), 2.0, jnp.float32),
         jnp.ones((1, H), jnp.float32)], axis=1)                 # (1, 4H)

    wih_t = (params["w_ih"].T * gate_scale).astype(matmul_dtype)    # (D, 4H)
    whh_t = (params["w_hh"].T * gate_scale).astype(matmul_dtype)    # (H, 4H)
    bias = ((params["b_ih"] + params["b_hh"]).reshape(1, 4 * H)
            * gate_scale).astype(jnp.float32)                       # (1, 4H)
    wfc = params["fc_w"].reshape(1, H).astype(jnp.float32)          # (1, H)
    bfc = params["fc_b"].reshape(1, 1).astype(jnp.float32)          # (1, 1)

    kernel = functools.partial(_lstm_head_kernel,
                               seq_len=T, batch_pad=Bp, hidden_dim=H)

    out_pad = pl.pallas_call(
        kernel,
        out_shape=jax.ShapeDtypeStruct((Bp, _OUT_LANES), jnp.float32),
        grid=(1,),
        in_specs=[
            pl.BlockSpec((T * Bp, D), lambda i: (0, 0)),      # x (flattened)
            pl.BlockSpec((D, 4 * H), lambda i: (0, 0)),       # W_ih^T (scaled)
            pl.BlockSpec((H, 4 * H), lambda i: (0, 0)),       # W_hh^T (scaled)
            pl.BlockSpec((1, 4 * H), lambda i: (0, 0)),       # b_ih + b_hh
            pl.BlockSpec((1, H), lambda i: (0, 0)),           # fc weight row
            pl.BlockSpec((1, 1), lambda i: (0, 0)),           # fc bias
        ],
        out_specs=pl.BlockSpec((Bp, _OUT_LANES), lambda i: (0, 0)),
        compiler_params=pltpu.CompilerParams(
            dimension_semantics=("arbitrary",)),
    )(x2d, wih_t, whh_t, bias, wfc, bfc)

    return out_pad[:B, :1]                                       # (B, 1)


def init_params(key, input_size, hidden_dim):
    """Deterministic init mirroring PyTorch default U(-1/sqrt(H), 1/sqrt(H))."""
    ks = jax.random.split(key, 6)
    stdv = 1.0 / jnp.sqrt(hidden_dim)
    u = lambda k, shape: jax.random.uniform(k, shape, jnp.float32, -stdv, stdv)
    return {
        "w_ih": u(ks[0], (4 * hidden_dim, input_size)),
        "w_hh": u(ks[1], (4 * hidden_dim, hidden_dim)),
        "b_ih": u(ks[2], (4 * hidden_dim,)),
        "b_hh": u(ks[3], (4 * hidden_dim,)),
        "fc_w": u(ks[4], (1, hidden_dim)),
        "fc_b": u(ks[5], (1,)),
    }


def reference_forward(x, params):
    """Pure-JAX reference of the PyTorch forward (lax.scan LSTM)."""
    B, T, D = x.shape
    H = params["w_hh"].shape[1]
    wih_t = params["w_ih"].T
    whh_t = params["w_hh"].T
    bias = params["b_ih"] + params["b_hh"]

    def step(carry, x_t):
        h, c = carry
        gates = x_t @ wih_t + h @ whh_t + bias
        i = jax.nn.sigmoid(gates[:, 0 * H:1 * H])
        f = jax.nn.sigmoid(gates[:, 1 * H:2 * H])
        g = jnp.tanh(gates[:, 2 * H:3 * H])
        o = jax.nn.sigmoid(gates[:, 3 * H:4 * H])
        c = f * c + i * g
        h = o * jnp.tanh(c)
        return (h, c), None

    h0 = jnp.zeros((B, H), jnp.float32)
    c0 = jnp.zeros((B, H), jnp.float32)
    (h_last, _), _ = jax.lax.scan(step, (h0, c0), jnp.transpose(x, (1, 0, 2)))
    out = jnp.maximum(h_last, 0.0) @ params["fc_w"].T + params["fc_b"]
    return out


if __name__ == "__main__":
    B, T, D, H = 2, 8, 16, 32

    params = init_params(jax.random.PRNGKey(42), input_size=D, hidden_dim=H)
    x = jax.random.normal(jax.random.PRNGKey(0), (B, T, D), jnp.float32)

    ref = reference_forward(x, params)

    # Default (f32 MXU operands) — exact path, tight tolerance.
    out = multi_route_rnn_forward(x, params)
    out = jax.block_until_ready(out)
    assert out.shape == (B, 1)
    assert jnp.allclose(out, ref, atol=1e-4, rtol=1e-4), (out, ref)

    # bf16 MXU operands (v6e/v7x perf mode) — elementwise math stays f32,
    # so only matmul operand rounding differs; relaxed tolerance.
    out_bf16 = multi_route_rnn_forward(x, params, matmul_dtype=jnp.bfloat16)
    out_bf16 = jax.block_until_ready(out_bf16)
    assert out_bf16.shape == (B, 1)
    assert jnp.allclose(out_bf16, ref, atol=5e-2, rtol=5e-2), (out_bf16, ref)

    print("KERNEL_OK")
</pallas_src>

<mosaic_0001>
module attributes {stable_mosaic.version = 11 : i64} {
  func.func @_lstm_head_kernel(%arg0: i32, %arg1: memref<64x16xf32, #tpu.memory_space<vmem>>, %arg2: memref<16x128xf32, #tpu.memory_space<vmem>>, %arg3: memref<32x128xf32, #tpu.memory_space<vmem>>, %arg4: memref<1x128xf32, #tpu.memory_space<vmem>>, %arg5: memref<1x32xf32, #tpu.memory_space<vmem>>, %arg6: memref<1x1xf32, #tpu.memory_space<vmem>>, %arg7: memref<8x128xf32, #tpu.memory_space<vmem>>) attributes {dimension_semantics = [#tpu.dimension_semantics<arbitrary>], iteration_bounds = array<i64: 1>, scalar_prefetch = 0 : i64, scratch_operands = 0 : i64, tpu.core_type = #tpu.core_type<tc>, window_params = [{pipeline_mode = #tpu.pipeline_mode<synchronous>, transform_indices = @transform_0, window_bounds = array<i64: 64, 16>}, {pipeline_mode = #tpu.pipeline_mode<synchronous>, transform_indices = @transform_1, window_bounds = array<i64: 16, 128>}, {pipeline_mode = #tpu.pipeline_mode<synchronous>, transform_indices = @transform_2, window_bounds = array<i64: 32, 128>}, {pipeline_mode = #tpu.pipeline_mode<synchronous>, transform_indices = @transform_3, window_bounds = array<i64: 1, 128>}, {pipeline_mode = #tpu.pipeline_mode<synchronous>, transform_indices = @transform_4, window_bounds = array<i64: 1, 32>}, {pipeline_mode = #tpu.pipeline_mode<synchronous>, transform_indices = @transform_5, window_bounds = array<i64: 1, 1>}, {pipeline_mode = #tpu.pipeline_mode<synchronous>, transform_indices = @transform_6, window_bounds = array<i64: 8, 128>}]} {
    %c0 = arith.constant 0 : index
    %c0_0 = arith.constant 0 : index
    %0 = vector.load %arg1[%c0, %c0_0] : memref<64x16xf32, #tpu.memory_space<vmem>>, vector<64x16xf32>
    %c0_1 = arith.constant 0 : index
    %c0_2 = arith.constant 0 : index
    %1 = vector.load %arg2[%c0_1, %c0_2] : memref<16x128xf32, #tpu.memory_space<vmem>>, vector<16x128xf32>
    %cst = arith.constant dense<0.000000e+00> : vector<64x128xf32>
    %2 = tpu.matmul %0, %1, %cst {dimension_numbers = #tpu.dot_dimension_numbers<[1], [0], [0], [1], [0, 0, 1, 1], [], []>} : vector<64x16xf32>, vector<16x128xf32>, vector<64x128xf32> -> vector<64x128xf32>
    %c0_3 = arith.constant 0 : index
    %c0_4 = arith.constant 0 : index
    %3 = vector.load %arg4[%c0_3, %c0_4] : memref<1x128xf32, #tpu.memory_space<vmem>>, vector<1x128xf32>
    %4 = vector.broadcast %3 : vector<1x128xf32> to vector<64x128xf32>
    %5 = arith.addf %2, %4 : vector<64x128xf32>
    %c0_5 = arith.constant 0 : index
    %c0_6 = arith.constant 0 : index
    %6 = vector.load %arg3[%c0_5, %c0_6] : memref<32x128xf32, #tpu.memory_space<vmem>>, vector<32x128xf32>
    %cst_7 = arith.constant 0.000000e+00 : f32
    %7 = vector.broadcast %cst_7 : f32 to vector<8x32xf32>
    %cst_8 = arith.constant 0.000000e+00 : f32
    %8 = vector.broadcast %cst_8 : f32 to vector<8x32xf32>
    %9 = vector.extract_strided_slice %5 {offsets = [0, 0], sizes = [8, 128], strides = [1, 1]} : vector<64x128xf32> to vector<8x128xf32>
    %cst_9 = arith.constant dense<0.000000e+00> : vector<8x128xf32>
    %10 = tpu.matmul %7, %6, %cst_9 {dimension_numbers = #tpu.dot_dimension_numbers<[1], [0], [0], [1], [0, 0, 1, 1], [], []>} : vector<8x32xf32>, vector<32x128xf32>, vector<8x128xf32> -> vector<8x128xf32>
    %11 = arith.addf %9, %10 : vector<8x128xf32>
    %12 = arith.negf %11 : vector<8x128xf32>
    %13 = math.exp %12 : vector<8x128xf32>
    %cst_10 = arith.constant 1.000000e+00 : f32
    %14 = vector.broadcast %cst_10 : f32 to vector<8x128xf32>
    %15 = arith.addf %14, %13 : vector<8x128xf32>
    %16 = arith.divf %14, %15 : vector<8x128xf32>
    %17 = vector.extract_strided_slice %16 {offsets = [0, 0], sizes = [8, 32], strides = [1, 1]} : vector<8x128xf32> to vector<8x32xf32>
    %18 = vector.extract_strided_slice %16 {offsets = [0, 32], sizes = [8, 32], strides = [1, 1]} : vector<8x128xf32> to vector<8x32xf32>
    %19 = vector.extract_strided_slice %16 {offsets = [0, 64], sizes = [8, 32], strides = [1, 1]} : vector<8x128xf32> to vector<8x32xf32>
    %cst_11 = arith.constant 2.000000e+00 : f32
    %20 = vector.broadcast %cst_11 : f32 to vector<8x32xf32>
    %21 = arith.mulf %20, %19 : vector<8x32xf32>
    %cst_12 = arith.constant 1.000000e+00 : f32
    %22 = vector.broadcast %cst_12 : f32 to vector<8x32xf32>
    %23 = arith.subf %21, %22 : vector<8x32xf32>
    %24 = vector.extract_strided_slice %16 {offsets = [0, 96], sizes = [8, 32], strides = [1, 1]} : vector<8x128xf32> to vector<8x32xf32>
    %25 = arith.mulf %18, %8 : vector<8x32xf32>
    %26 = arith.mulf %17, %23 : vector<8x32xf32>
    %27 = arith.addf %25, %26 : vector<8x32xf32>
    %28 = math.tanh %27 : vector<8x32xf32>
    %29 = arith.mulf %24, %28 : vector<8x32xf32>
    %30 = vector.extract_strided_slice %5 {offsets = [8, 0], sizes = [8, 128], strides = [1, 1]} : vector<64x128xf32> to vector<8x128xf32>
    %cst_13 = arith.constant dense<0.000000e+00> : vector<8x128xf32>
    %31 = tpu.matmul %29, %6, %cst_13 {dimension_numbers = #tpu.dot_dimension_numbers<[1], [0], [0], [1], [0, 0, 1, 1], [], []>} : vector<8x32xf32>, vector<32x128xf32>, vector<8x128xf32> -> vector<8x128xf32>
    %32 = arith.addf %30, %31 : vector<8x128xf32>
    %33 = arith.negf %32 : vector<8x128xf32>
    %34 = math.exp %33 : vector<8x128xf32>
    %cst_14 = arith.constant 1.000000e+00 : f32
    %35 = vector.broadcast %cst_14 : f32 to vector<8x128xf32>
    %36 = arith.addf %35, %34 : vector<8x128xf32>
    %37 = arith.divf %35, %36 : vector<8x128xf32>
    %38 = vector.extract_strided_slice %37 {offsets = [0, 0], sizes = [8, 32], strides = [1, 1]} : vector<8x128xf32> to vector<8x32xf32>
    %39 = vector.extract_strided_slice %37 {offsets = [0, 32], sizes = [8, 32], strides = [1, 1]} : vector<8x128xf32> to vector<8x32xf32>
    %40 = vector.extract_strided_slice %37 {offsets = [0, 64], sizes = [8, 32], strides = [1, 1]} : vector<8x128xf32> to vector<8x32xf32>
    %cst_15 = arith.constant 2.000000e+00 : f32
    %41 = vector.broadcast %cst_15 : f32 to vector<8x32xf32>
    %42 = arith.mulf %41, %40 : vector<8x32xf32>
    %cst_16 = arith.constant 1.000000e+00 : f32
    %43 = vector.broadcast %cst_16 : f32 to vector<8x32xf32>
    %44 = arith.subf %42, %43 : vector<8x32xf32>
    %45 = vector.extract_strided_slice %37 {offsets = [0, 96], sizes = [8, 32], strides = [1, 1]} : vector<8x128xf32> to vector<8x32xf32>
    %46 = arith.mulf %39, %27 : vector<8x32xf32>
    %47 = arith.mulf %38, %44 : vector<8x32xf32>
    %48 = arith.addf %46, %47 : vector<8x32xf32>
    %49 = math.tanh %48 : vector<8x32xf32>
    %50 = arith.mulf %45, %49 : vector<8x32xf32>
    %51 = vector.extract_strided_slice %5 {offsets = [16, 0], sizes = [8, 128], strides = [1, 1]} : vector<64x128xf32> to vector<8x128xf32>
    %cst_17 = arith.constant dense<0.000000e+00> : vector<8x128xf32>
    %52 = tpu.matmul %50, %6, %cst_17 {dimension_numbers = #tpu.dot_dimension_numbers<[1], [0], [0], [1], [0, 0, 1, 1], [], []>} : vector<8x32xf32>, vector<32x128xf32>, vector<8x128xf32> -> vector<8x128xf32>
    %53 = arith.addf %51, %52 : vector<8x128xf32>
    %54 = arith.negf %53 : vector<8x128xf32>
    %55 = math.exp %54 : vector<8x128xf32>
    %cst_18 = arith.constant 1.000000e+00 : f32
    %56 = vector.broadcast %cst_18 : f32 to vector<8x128xf32>
    %57 = arith.addf %56, %55 : vector<8x128xf32>
    %58 = arith.divf %56, %57 : vector<8x128xf32>
    %59 = vector.extract_strided_slice %58 {offsets = [0, 0], sizes = [8, 32], strides = [1, 1]} : vector<8x128xf32> to vector<8x32xf32>
    %60 = vector.extract_strided_slice %58 {offsets = [0, 32], sizes = [8, 32], strides = [1, 1]} : vector<8x128xf32> to vector<8x32xf32>
    %61 = vector.extract_strided_slice %58 {offsets = [0, 64], sizes = [8, 32], strides = [1, 1]} : vector<8x128xf32> to vector<8x32xf32>
    %cst_19 = arith.constant 2.000000e+00 : f32
    %62 = vector.broadcast %cst_19 : f32 to vector<8x32xf32>
    %63 = arith.mulf %62, %61 : vector<8x32xf32>
    %cst_20 = arith.constant 1.000000e+00 : f32
    %64 = vector.broadcast %cst_20 : f32 to vector<8x32xf32>
    %65 = arith.subf %63, %64 : vector<8x32xf32>
    %66 = vector.extract_strided_slice %58 {offsets = [0, 96], sizes = [8, 32], strides = [1, 1]} : vector<8x128xf32> to vector<8x32xf32>
    %67 = arith.mulf %60, %48 : vector<8x32xf32>
    %68 = arith.mulf %59, %65 : vector<8x32xf32>
    %69 = arith.addf %67, %68 : vector<8x32xf32>
    %70 = math.tanh %69 : vector<8x32xf32>
    %71 = arith.mulf %66, %70 : vector<8x32xf32>
    %72 = vector.extract_strided_slice %5 {offsets = [24, 0], sizes = [8, 128], strides = [1, 1]} : vector<64x128xf32> to vector<8x128xf32>
    %cst_21 = arith.constant dense<0.000000e+00> : vector<8x128xf32>
    %73 = tpu.matmul %71, %6, %cst_21 {dimension_numbers = #tpu.dot_dimension_numbers<[1], [0], [0], [1], [0, 0, 1, 1], [], []>} : vector<8x32xf32>, vector<32x128xf32>, vector<8x128xf32> -> vector<8x128xf32>
    %74 = arith.addf %72, %73 : vector<8x128xf32>
    %75 = arith.negf %74 : vector<8x128xf32>
    %76 = math.exp %75 : vector<8x128xf32>
    %cst_22 = arith.constant 1.000000e+00 : f32
    %77 = vector.broadcast %cst_22 : f32 to vector<8x128xf32>
    %78 = arith.addf %77, %76 : vector<8x128xf32>
    %79 = arith.divf %77, %78 : vector<8x128xf32>
    %80 = vector.extract_strided_slice %79 {offsets = [0, 0], sizes = [8, 32], strides = [1, 1]} : vector<8x128xf32> to vector<8x32xf32>
    %81 = vector.extract_strided_slice %79 {offsets = [0, 32], sizes = [8, 32], strides = [1, 1]} : vector<8x128xf32> to vector<8x32xf32>
    %82 = vector.extract_strided_slice %79 {offsets = [0, 64], sizes = [8, 32], strides = [1, 1]} : vector<8x128xf32> to vector<8x32xf32>
    %cst_23 = arith.constant 2.000000e+00 : f32
    %83 = vector.broadcast %cst_23 : f32 to vector<8x32xf32>
    %84 = arith.mulf %83, %82 : vector<8x32xf32>
    %cst_24 = arith.constant 1.000000e+00 : f32
    %85 = vector.broadcast %cst_24 : f32 to vector<8x32xf32>
    %86 = arith.subf %84, %85 : vector<8x32xf32>
    %87 = vector.extract_strided_slice %79 {offsets = [0, 96], sizes = [8, 32], strides = [1, 1]} : vector<8x128xf32> to vector<8x32xf32>
    %88 = arith.mulf %81, %69 : vector<8x32xf32>
    %89 = arith.mulf %80, %86 : vector<8x32xf32>
    %90 = arith.addf %88, %89 : vector<8x32xf32>
    %91 = math.tanh %90 : vector<8x32xf32>
    %92 = arith.mulf %87, %91 : vector<8x32xf32>
    %93 = vector.extract_strided_slice %5 {offsets = [32, 0], sizes = [8, 128], strides = [1, 1]} : vector<64x128xf32> to vector<8x128xf32>
    %cst_25 = arith.constant dense<0.000000e+00> : vector<8x128xf32>
    %94 = tpu.matmul %92, %6, %cst_25 {dimension_numbers = #tpu.dot_dimension_numbers<[1], [0], [0], [1], [0, 0, 1, 1], [], []>} : vector<8x32xf32>, vector<32x128xf32>, vector<8x128xf32> -> vector<8x128xf32>
    %95 = arith.addf %93, %94 : vector<8x128xf32>
    %96 = arith.negf %95 : vector<8x128xf32>
    %97 = math.exp %96 : vector<8x128xf32>
    %cst_26 = arith.constant 1.000000e+00 : f32
    %98 = vector.broadcast %cst_26 : f32 to vector<8x128xf32>
    %99 = arith.addf %98, %97 : vector<8x128xf32>
    %100 = arith.divf %98, %99 : vector<8x128xf32>
    %101 = vector.extract_strided_slice %100 {offsets = [0, 0], sizes = [8, 32], strides = [1, 1]} : vector<8x128xf32> to vector<8x32xf32>
    %102 = vector.extract_strided_slice %100 {offsets = [0, 32], sizes = [8, 32], strides = [1, 1]} : vector<8x128xf32> to vector<8x32xf32>
    %103 = vector.extract_strided_slice %100 {offsets = [0, 64], sizes = [8, 32], strides = [1, 1]} : vector<8x128xf32> to vector<8x32xf32>
    %cst_27 = arith.constant 2.000000e+00 : f32
    %104 = vector.broadcast %cst_27 : f32 to vector<8x32xf32>
    %105 = arith.mulf %104, %103 : vector<8x32xf32>
    %cst_28 = arith.constant 1.000000e+00 : f32
    %106 = vector.broadcast %cst_28 : f32 to vector<8x32xf32>
    %107 = arith.subf %105, %106 : vector<8x32xf32>
    %108 = vector.extract_strided_slice %100 {offsets = [0, 96], sizes = [8, 32], strides = [1, 1]} : vector<8x128xf32> to vector<8x32xf32>
    %109 = arith.mulf %102, %90 : vector<8x32xf32>
    %110 = arith.mulf %101, %107 : vector<8x32xf32>
    %111 = arith.addf %109, %110 : vector<8x32xf32>
    %112 = math.tanh %111 : vector<8x32xf32>
    %113 = arith.mulf %108, %112 : vector<8x32xf32>
    %114 = vector.extract_strided_slice %5 {offsets = [40, 0], sizes = [8, 128], strides = [1, 1]} : vector<64x128xf32> to vector<8x128xf32>
    %cst_29 = arith.constant dense<0.000000e+00> : vector<8x128xf32>
    %115 = tpu.matmul %113, %6, %cst_29 {dimension_numbers = #tpu.dot_dimension_numbers<[1], [0], [0], [1], [0, 0, 1, 1], [], []>} : vector<8x32xf32>, vector<32x128xf32>, vector<8x128xf32> -> vector<8x128xf32>
    %116 = arith.addf %114, %115 : vector<8x128xf32>
    %117 = arith.negf %116 : vector<8x128xf32>
    %118 = math.exp %117 : vector<8x128xf32>
    %cst_30 = arith.constant 1.000000e+00 : f32
    %119 = vector.broadcast %cst_30 : f32 to vector<8x128xf32>
    %120 = arith.addf %119, %118 : vector<8x128xf32>
    %121 = arith.divf %119, %120 : vector<8x128xf32>
    %122 = vector.extract_strided_slice %121 {offsets = [0, 0], sizes = [8, 32], strides = [1, 1]} : vector<8x128xf32> to vector<8x32xf32>
    %123 = vector.extract_strided_slice %121 {offsets = [0, 32], sizes = [8, 32], strides = [1, 1]} : vector<8x128xf32> to vector<8x32xf32>
    %124 = vector.extract_strided_slice %121 {offsets = [0, 64], sizes = [8, 32], strides = [1, 1]} : vector<8x128xf32> to vector<8x32xf32>
    %cst_31 = arith.constant 2.000000e+00 : f32
    %125 = vector.broadcast %cst_31 : f32 to vector<8x32xf32>
    %126 = arith.mulf %125, %124 : vector<8x32xf32>
    %cst_32 = arith.constant 1.000000e+00 : f32
    %127 = vector.broadcast %cst_32 : f32 to vector<8x32xf32>
    %128 = arith.subf %126, %127 : vector<8x32xf32>
    %129 = vector.extract_strided_slice %121 {offsets = [0, 96], sizes = [8, 32], strides = [1, 1]} : vector<8x128xf32> to vector<8x32xf32>
    %130 = arith.mulf %123, %111 : vector<8x32xf32>
    %131 = arith.mulf %122, %128 : vector<8x32xf32>
    %132 = arith.addf %130, %131 : vector<8x32xf32>
    %133 = math.tanh %132 : vector<8x32xf32>
    %134 = arith.mulf %129, %133 : vector<8x32xf32>
    %135 = vector.extract_strided_slice %5 {offsets = [48, 0], sizes = [8, 128], strides = [1, 1]} : vector<64x128xf32> to vector<8x128xf32>
    %cst_33 = arith.constant dense<0.000000e+00> : vector<8x128xf32>
    %136 = tpu.matmul %134, %6, %cst_33 {dimension_numbers = #tpu.dot_dimension_numbers<[1], [0], [0], [1], [0, 0, 1, 1], [], []>} : vector<8x32xf32>, vector<32x128xf32>, vector<8x128xf32> -> vector<8x128xf32>
    %137 = arith.addf %135, %136 : vector<8x128xf32>
    %138 = arith.negf %137 : vector<8x128xf32>
    %139 = math.exp %138 : vector<8x128xf32>
    %cst_34 = arith.constant 1.000000e+00 : f32
    %140 = vector.broadcast %cst_34 : f32 to vector<8x128xf32>
    %141 = arith.addf %140, %139 : vector<8x128xf32>
    %142 = arith.divf %140, %141 : vector<8x128xf32>
    %143 = vector.extract_strided_slice %142 {offsets = [0, 0], sizes = [8, 32], strides = [1, 1]} : vector<8x128xf32> to vector<8x32xf32>
    %144 = vector.extract_strided_slice %142 {offsets = [0, 32], sizes = [8, 32], strides = [1, 1]} : vector<8x128xf32> to vector<8x32xf32>
    %145 = vector.extract_strided_slice %142 {offsets = [0, 64], sizes = [8, 32], strides = [1, 1]} : vector<8x128xf32> to vector<8x32xf32>
    %cst_35 = arith.constant 2.000000e+00 : f32
    %146 = vector.broadcast %cst_35 : f32 to vector<8x32xf32>
    %147 = arith.mulf %146, %145 : vector<8x32xf32>
    %cst_36 = arith.constant 1.000000e+00 : f32
    %148 = vector.broadcast %cst_36 : f32 to vector<8x32xf32>
    %149 = arith.subf %147, %148 : vector<8x32xf32>
    %150 = vector.extract_strided_slice %142 {offsets = [0, 96], sizes = [8, 32], strides = [1, 1]} : vector<8x128xf32> to vector<8x32xf32>
    %151 = arith.mulf %144, %132 : vector<8x32xf32>
    %152 = arith.mulf %143, %149 : vector<8x32xf32>
    %153 = arith.addf %151, %152 : vector<8x32xf32>
    %154 = math.tanh %153 : vector<8x32xf32>
    %155 = arith.mulf %150, %154 : vector<8x32xf32>
    %156 = vector.extract_strided_slice %5 {offsets = [56, 0], sizes = [8, 128], strides = [1, 1]} : vector<64x128xf32> to vector<8x128xf32>
    %cst_37 = arith.constant dense<0.000000e+00> : vector<8x128xf32>
    %157 = tpu.matmul %155, %6, %cst_37 {dimension_numbers = #tpu.dot_dimension_numbers<[1], [0], [0], [1], [0, 0, 1, 1], [], []>} : vector<8x32xf32>, vector<32x128xf32>, vector<8x128xf32> -> vector<8x128xf32>
    %158 = arith.addf %156, %157 : vector<8x128xf32>
    %159 = arith.negf %158 : vector<8x128xf32>
    %160 = math.exp %159 : vector<8x128xf32>
    %cst_38 = arith.constant 1.000000e+00 : f32
    %161 = vector.broadcast %cst_38 : f32 to vector<8x128xf32>
    %162 = arith.addf %161, %160 : vector<8x128xf32>
    %163 = arith.divf %161, %162 : vector<8x128xf32>
    %164 = vector.extract_strided_slice %163 {offsets = [0, 0], sizes = [8, 32], strides = [1, 1]} : vector<8x128xf32> to vector<8x32xf32>
    %165 = vector.extract_strided_slice %163 {offsets = [0, 32], sizes = [8, 32], strides = [1, 1]} : vector<8x128xf32> to vector<8x32xf32>
    %166 = vector.extract_strided_slice %163 {offsets = [0, 64], sizes = [8, 32], strides = [1, 1]} : vector<8x128xf32> to vector<8x32xf32>
    %cst_39 = arith.constant 2.000000e+00 : f32
    %167 = vector.broadcast %cst_39 : f32 to vector<8x32xf32>
    %168 = arith.mulf %167, %166 : vector<8x32xf32>
    %cst_40 = arith.constant 1.000000e+00 : f32
    %169 = vector.broadcast %cst_40 : f32 to vector<8x32xf32>
    %170 = arith.subf %168, %169 : vector<8x32xf32>
    %171 = vector.extract_strided_slice %163 {offsets = [0, 96], sizes = [8, 32], strides = [1, 1]} : vector<8x128xf32> to vector<8x32xf32>
    %172 = arith.mulf %165, %153 : vector<8x32xf32>
    %173 = arith.mulf %164, %170 : vector<8x32xf32>
    %174 = arith.addf %172, %173 : vector<8x32xf32>
    %175 = math.tanh %174 : vector<8x32xf32>
    %176 = arith.mulf %171, %175 : vector<8x32xf32>
    %cst_41 = arith.constant 0.000000e+00 : f32
    %177 = vector.broadcast %cst_41 : f32 to vector<8x32xf32>
    %178 = arith.maximumf %176, %177 : vector<8x32xf32>
    %c0_42 = arith.constant 0 : index
    %c0_43 = arith.constant 0 : index
    %179 = vector.load %arg5[%c0_42, %c0_43] : memref<1x32xf32, #tpu.memory_space<vmem>>, vector<1x32xf32>
    %180 = vector.broadcast %179 : vector<1x32xf32> to vector<8x32xf32>
    %181 = arith.mulf %178, %180 : vector<8x32xf32>
    %cst_44 = arith.constant dense<0.000000e+00> : vector<8xf32>
    %182 = vector.multi_reduction <add>, %181, %cst_44 [1] : vector<8x32xf32> to vector<8xf32>
    %183 = vector.shape_cast %182 : vector<8xf32> to vector<8x1xf32>
    %c0_45 = arith.constant 0 : index
    %c0_46 = arith.constant 0 : index
    %184 = vector.load %arg6[%c0_45, %c0_46] : memref<1x1xf32, #tpu.memory_space<vmem>>, vector<1x1xf32>
    %185 = vector.broadcast %184 : vector<1x1xf32> to vector<8x1xf32>
    %186 = arith.addf %183, %185 : vector<8x1xf32>
    %187 = vector.shape_cast %186 : vector<8x1xf32> to vector<8x1xf32>
    %188 = vector.broadcast %187 : vector<8x1xf32> to vector<8x128xf32>
    %c0_47 = arith.constant 0 : index
    %c0_48 = arith.constant 0 : index
    %189 = vector.load %arg7[%c0_47, %c0_48] : memref<8x128xf32, #tpu.memory_space<vmem>>, vector<8x128xf32>
    tpu.vector_store %arg7[%c0_47, %c0_48], %188 {strides = array<i32>} : memref<8x128xf32, #tpu.memory_space<vmem>>, vector<8x128xf32>,
    return
  }
  func.func @transform_0(%arg0: i32) -> (i32, i32) {
    %c0_i32 = arith.constant 0 : i32
    %c0_i32_0 = arith.constant 0 : i32
    %c0_i32_1 = arith.constant 0 : i32
    return %c0_i32, %c0_i32_0 : i32, i32
  }
  func.func @transform_1(%arg0: i32) -> (i32, i32) {
    %c0_i32 = arith.constant 0 : i32
    %c0_i32_0 = arith.constant 0 : i32
    %c0_i32_1 = arith.constant 0 : i32
    return %c0_i32, %c0_i32_0 : i32, i32
  }
  func.func @transform_2(%arg0: i32) -> (i32, i32) {
    %c0_i32 = arith.constant 0 : i32
    %c0_i32_0 = arith.constant 0 : i32
    %c0_i32_1 = arith.constant 0 : i32
    return %c0_i32, %c0_i32_0 : i32, i32
  }
  func.func @transform_3(%arg0: i32) -> (i32, i32) {
    %c0_i32 = arith.constant 0 : i32
    %c0_i32_0 = arith.constant 0 : i32
    %c0_i32_1 = arith.constant 0 : i32
    return %c0_i32, %c0_i32_0 : i32, i32
  }
  func.func @transform_4(%arg0: i32) -> (i32, i32) {
    %c0_i32 = arith.constant 0 : i32
    %c0_i32_0 = arith.constant 0 : i32
    %c0_i32_1 = arith.constant 0 : i32
    return %c0_i32, %c0_i32_0 : i32, i32
  }
  func.func @transform_5(%arg0: i32) -> (i32, i32) {
    %c0_i32 = arith.constant 0 : i32
    %c0_i32_0 = arith.constant 0 : i32
    %c0_i32_1 = arith.constant 0 : i32
    return %c0_i32, %c0_i32_0 : i32, i32
  }
  func.func @transform_6(%arg0: i32) -> (i32, i32) {
    %c0_i32 = arith.constant 0 : i32
    %c0_i32_0 = arith.constant 0 : i32
    %c0_i32_1 = arith.constant 0 : i32
    return %c0_i32, %c0_i32_0 : i32, i32
  }
}

</mosaic_0001>

<bundles_post_ra>
// kernel: tpu_custom_call.1
= control target key start
LH: loop header
LB: loop body
LE: loop exit
PB: predicated region body
PF: predicated region fallthrough
CT: control target
= control target key end

     0   :  { %s1580_s0 = inlined_call_operand.vmem [shape: f32[64,16], index: 0, kind: input, shape index: {}]   ;;  %s1581_s1 = inlined_call_operand.vmem [shape: f32[16,128], index: 1, kind: input, shape index: {}]   ;;  %s1582_s2 = inlined_call_operand.vmem [shape: f32[32,128], index: 2, kind: input, shape index: {}]   ;;  %s1583_s3 = inlined_call_operand.vmem [shape: f32[1,128], index: 3, kind: input, shape index: {}]   ;;  %s1584_s4 = inlined_call_operand.vmem [shape: f32[1,32], index: 4, kind: input, shape index: {}]   ;;  %s1585_s5 = inlined_call_operand.<no memory space> [shape: f32[1,1], index: 5, kind: input, shape index: {}]   ;;  %s1586_s6 = inlined_call_operand.hbm [shape: f32[8,128], index: 6, kind: output, shape index: {}]  }
   0x1   :  { %v11_v0 = vstv %s1585_s5 }
   0x2   :  { %12 = vst [vmem:[#allocation2] sm:$0x1] %v11_v0 }
   0x3   :  { %v34_v1 = vld [vmem:[%s1581_s1] sm:$0xff]  ;;  %v35_v2 = vld [vmem:[%s1581_s1 + $0x8] sm:$0xff]  ;;  %vm43_vm0 = vcmask 130048   ;;  %v1351_v4 = vmov 0.0|0.0   ;;  %v175_v9 = vld [vmem:[%s1582_s2 + $0x10] sm:$0xff]  ;;  %vm1352_vm1 = vmmov 0  }
   0x4   :  { %v173_v3 = vld [vmem:[%s1582_s2] sm:$0xff]  ;;  %1222 = vmatprep.subr.bf16.mxu1 %v1351_v4  ;;  %v1218_v5 = vpack.c.bf16 %v35_v2, %v34_v1  ;;  %v174_v6 = vld [vmem:[%s1582_s2 + $0x8] sm:$0xff]  ;;  %v176_v10 = vld [vmem:[%s1582_s2 + $0x18] sm:$0xff]  ;;  %v1353_v11 = vmov 0.0  }
   0x5   :  { %v26_v7 = vld [vmem:[%s1580_s0] sm:$0xff]  ;;  %v1413_v8 = vpack.c.bf16 %v174_v6, %v173_v3  ;;  %1138 = vmatprep.mubr.msk.f32.mxu1 %vm1352_vm1, %v1353_v11 }
   0x6   :  { %1118 = vmatprep.mubr.msk.f32.mxu0 %vm43_vm0, %v26_v7 }
   0x7   :  { %13 = vsyncpa [#allocation4], 0  ;;  %1219 = vmatprep.subr.bf16.mxu0 %v1218_v5  ;;  %1224 = vmatpush3.bf16.msra.mxu1 %v1413_v8  ;;  %v27_v12 = vld [vmem:[%s1580_s0 + $0x8] sm:$0xff]  ;;  %v1428_v13 = vpack.c.bf16 %v176_v10, %v175_v9  ;;  %v1449_v14 = vld [vmem:[%s1583_s3] ss:$0 sm:$0xff]  ;;  %s1354_s14 = smov 64  }
   0x8   :  { %1221 = vmatpush3.bf16.msra.mxu0 %v1218_v5  ;;  %1225 = vmatprep.subr.bf16.mxu1 %v1351_v4  ;;  %s1355_s3 = smov 32   ;;  %vm177_vm2 = vcmask 261120   ;;  %v28_v51 = vld [vmem:[%s1580_s0 + $0x10] sm:$0xff]  ;;  %v29_v52 = vld [vmem:[%s1580_s0 + $0x18] sm:$0xff]  ;;  %v30_v53 = vld [vmem:[%s1580_s0 + $0x20] sm:$0xff]  ;;  %s1356_s28 = smov 96  }
   0x9   :  { %1234 = vmatprep.subr.bf16.mxu0 %v1351_v4  ;;  %v31_v54 = vld [vmem:[%s1580_s0 + $0x28] sm:$0xff]  ;;  %v32_v55 = vld [vmem:[%s1580_s0 + $0x30] sm:$0xff]  ;;  %v33_v56 = vld [vmem:[%s1580_s0 + $0x38] sm:$0xff] }
   0xb   :  { %1119 = vmatmul.mubr.msk.f32.vlgmr.msra.gmra.mrb[0].mxu0 %vm43_vm0, %v27_v12  ;;  %1227 = vmatpush3.bf16.msra.mxu1 %v1428_v13 }
   0xc   :  { %1236 = vmatpush3.bf16.msra.mxu0 %v1413_v8  ;;  %1228 = vmatprep.subr.bf16.mxu1 %v1351_v4 }
   0xd   :  { %1237 = vmatprep.subr.bf16.mxu0 %v1351_v4  ;;  %1121 = vmatprep.mubr.msk.f32.mxu0 %vm43_vm0, %v28_v51 }
   0xe   :  { %1139 = vmatmul.mubr.f32.vlgmr.msra.gmra.mrb[0].mxu1 %v1353_v11 }
   0xf   :  { %1230 = vmatpush3.bf16.msra.mxu1 %v1413_v8  ;;  %1149 = vmatprep.mubr.msk.f32.mxu1 %vm1352_vm1, %v1353_v11 }
  0x10   :  { %1231 = vmatprep.subr.bf16.mxu1 %v1351_v4  ;;  %1239 = vmatpush3.bf16.msra.mxu0 %v1428_v13 }
  0x11   :  { %1246 = vmatprep.subr.bf16.mxu0 %v1351_v4  ;;  %1122 = vmatmul.mubr.msk.f32.gmra.mrb[2].mxu0 %vm43_vm0, %v29_v52 }
  0x12   :  { %1124 = vmatprep.mubr.msk.f32.mxu0 %vm43_vm0, %v30_v53 }
  0x13   :  { %1233 = vmatpush3.bf16.msra.mxu1 %v1428_v13 }
  0x14   :  { %1240 = vmatprep.subr.bf16.mxu1 %v1351_v4 }
  0x15   :  { %1125 = vmatmul.mubr.msk.f32.gmra.mrb[4].mxu0 %vm43_vm0, %v31_v54 }
  0x16   :  { %1127 = vmatprep.mubr.msk.f32.mxu0 %vm43_vm0, %v32_v55 }
  0x19   :  { %1128 = vmatmul.mubr.msk.f32.gmra.mrb[6].mxu0 %vm43_vm0, %v33_v56 }
  0x1a   :  { %1160 = vmatprep.mubr.msk.f32.mxu0 %vm1352_vm1, %v1353_v11 }
  0xde   :  { %v1120_v15 = vpop.f32.mrb[0].mxu0 }
  0xdf   :  { %v134_v16 = vpop.f32.mrb[1].mxu0  ;;  %v140_v36 = vadd.f32 %v1120_v15, %v1449_v14 }
  0xe0   :  { %v135_v17 = vadd.f32 %v1449_v14, %v134_v16 }
  0xe1   :  { %v247_v18 = vpop.f32.mrb[0].mxu1 }
  0xe2   :  { %v251_v19 = vadd.f32 %v247_v18, %v135_v17  ;;  %v1140_v20 = vpop.f32.mrb[1].mxu1 }
  0xe4   :  { %v1039_v21 = vmul.f32 -1.442695, %v251_v19  ;;  %v1123_v60 = vpop.f32.mrb[2].mxu0 }
  0xe5   :  { %v144_v61 = vpop.f32.mrb[3].mxu0 }
  0xe6   :  { %1279 = vpow2.f32 %v1039_v21  ;;  %v145_v3 = vadd.f32 %v1449_v14, %v144_v61 }
  0xe8   :  { %v1494_v62 = vpop.f32.mrb[4].mxu0 }
  0xe9   :  { %v1496_v63 = vpop.f32.mrb[5].mxu0 }
  0xec   :  { %v1498_v0 = vpop.f32.mrb[6].mxu0 }
  0xed   :  { %v1500_v1 = vpop.f32.mrb[7].mxu0 }
  0xf0   :  { %v1280_v22 = vpop.eup %1279 }
  0xf1   :  { %v255_v23 = vadd.f32 1.0, %v1280_v22 }
  0xf3   :  { %1281 = vrcp.f32 %v255_v23 }
  0xfd   :  { %v1282_v24 = vpop.eup %1281 }
  0xfe   :  { %v258_v25 = vmul.f32 2.0, %v1282_v24  ;;  %v260_v29 = vmul.f32 0.0, %v1282_v24 }
 0x100   :  { %v1040_v26 = vadd.f32 -1.0, %v258_v25 }
 0x102   :  { %262 = vrot.lane.b32.xlu0 %v1040_v26, %s1354_s14 }
 0x174   :  { %v263_v27 = vpop.permute.xlu0 %262 }
 0x175   :  { %v265_v28 = vmul.f32 %v1282_v24, %v263_v27  ;;  %v150_v27 = vadd.f32 %v1123_v60, %v1449_v14 }
 0x177   :  { %267 = vrot.lane.b32.xlu0 %v265_v28, %s1355_s3 }
 0x1e9   :  { %v268_v30 = vpop.permute.xlu0 %267 }
 0x1ea   :  { %v270_v31 = vadd.f32 %v268_v30, %v260_v29 }
 0x1ec   :  { %1283 = vtanh.f32 %v270_v31 }
 0x1f6   :  { %v1284_v32 = vpop.eup %1283 }
 0x1f7   :  { %273 = vrot.lane.b32.xlu1 %v1284_v32, %s1354_s14 }
 0x269   :  { %v274_v33 = vpop.permute.xlu1 %273 }
 0x26a   :  { %v276_v34 = vmul.f32 %v1282_v24, %v274_v33 }
 0x26c   :  { %278 = vrot.lane.b32.xlu1 %v276_v34, %s1355_s3 }
 0x2de   :  { %v279_v35 = vpop.permute.xlu1 %278 }
 0x2df   :  { %1150 = vmatmul.mubr.msk.f32.vlgmr.msra.gmra.mrb[2].mxu1 %vm177_vm2, %v279_v35 }
 0x2e0   :  { %1242 = vmatpush3.bf16.msra.mxu1 %v1413_v8  ;;  %1171 = vmatprep.mubr.msk.f32.mxu1 %vm1352_vm1, %v1353_v11 }
 0x2e1   :  { %1243 = vmatprep.subr.bf16.mxu1 %v1351_v4 }
 0x2e4   :  { %1245 = vmatpush3.bf16.msra.mxu1 %v1428_v13 }
 0x2e5   :  { %1252 = vmatprep.subr.bf16.mxu1 %v1351_v4 }
 0x3b2   :  { %v348_v37 = vpop.f32.mrb[2].mxu1 }
 0x3b3   :  { %v352_v38 = vadd.f32 %v348_v37, %v140_v36  ;;  %v1151_v39 = vpop.f32.mrb[3].mxu1 }
 0x3b5   :  { %v1042_v40 = vmul.f32 -1.442695, %v352_v38 }
 0x3b7   :  { %1285 = vpow2.f32 %v1042_v40 }
 0x3c1   :  { %v1286_v41 = vpop.eup %1285 }
 0x3c2   :  { %v356_v42 = vadd.f32 1.0, %v1286_v41 }
 0x3c4   :  { %1287 = vrcp.f32 %v356_v42 }
 0x3ce   :  { %v1288_v43 = vpop.eup %1287 }
 0x3cf   :  { %v359_v44 = vmul.f32 2.0, %v1288_v43  ;;  %v361_v48 = vmul.f32 %v1288_v43, %v270_v31 }
 0x3d1   :  { %v1043_v45 = vadd.f32 -1.0, %v359_v44 }
 0x3d3   :  { %363 = vrot.lane.b32.xlu0 %v1043_v45, %s1354_s14 }
 0x445   :  { %v364_v46 = vpop.permute.xlu0 %363 }
 0x446   :  { %v366_v47 = vmul.f32 %v1288_v43, %v364_v46  ;;  %v155_v46 = vadd.f32 %v1449_v14, %v1496_v63 }
 0x448   :  { %368 = vrot.lane.b32.xlu1 %v366_v47, %s1355_s3 }
 0x4ba   :  { %v369_v49 = vpop.permute.xlu1 %368 }
 0x4bb   :  { %v371_v50 = vadd.f32 %v369_v49, %v361_v48 }
 0x4bd   :  { %1289 = vtanh.f32 %v371_v50 }
 0x4c7   :  { %v1290_v57 = vpop.eup %1289 }
 0x4c8   :  { %374 = vrot.lane.b32.xlu0 %v1290_v57, %s1354_s14 }
 0x53a   :  { %v375_v58 = vpop.permute.xlu0 %374 }
 0x53b   :  { %v377_v59 = vmul.f32 %v1288_v43, %v375_v58 }
 0x53d   :  { %379 = vrot.lane.b32.xlu1 %v377_v59, %s1355_s3 }
 0x5af   :  { %v380_v2 = vpop.permute.xlu1 %379 }
 0x5b0   :  { %1161 = vmatmul.mubr.msk.f32.vlgmr.msra.gmra.mrb[8].mxu0 %vm177_vm2, %v380_v2 }
 0x5b1   :  { %1248 = vmatpush3.bf16.msra.mxu0 %v1413_v8  ;;  %1182 = vmatprep.mubr.msk.f32.mxu0 %vm1352_vm1, %v1353_v11 }
 0x5b2   :  { %1249 = vmatprep.subr.bf16.mxu0 %v1351_v4 }
 0x5b5   :  { %1251 = vmatpush3.bf16.msra.mxu0 %v1428_v13 }
 0x5b6   :  { %1258 = vmatprep.subr.bf16.mxu0 %v1351_v4 }
 0x683   :  { %v449_v5 = vpop.f32.mrb[8].mxu0 }
 0x684   :  { %v453_v6 = vadd.f32 %v449_v5, %v145_v3  ;;  %v1162_v7 = vpop.f32.mrb[9].mxu0  ;;  %v160_v5 = vadd.f32 %v1494_v62, %v1449_v14 }
 0x686   :  { %v1045_v9 = vmul.f32 -1.442695, %v453_v6 }
 0x688   :  { %1291 = vpow2.f32 %v1045_v9 }
 0x692   :  { %v1292_v10 = vpop.eup %1291 }
 0x693   :  { %v457_v12 = vadd.f32 1.0, %v1292_v10 }
 0x695   :  { %1293 = vrcp.f32 %v457_v12 }
 0x69f   :  { %v1294_v15 = vpop.eup %1293 }
 0x6a0   :  { %v460_v16 = vmul.f32 2.0, %v1294_v15  ;;  %v462_v20 = vmul.f32 %v1294_v15, %v371_v50 }
 0x6a2   :  { %v1046_v17 = vadd.f32 -1.0, %v460_v16 }
 0x6a4   :  { %464 = vrot.lane.b32.xlu0 %v1046_v17, %s1354_s14 }
 0x716   :  { %v465_v18 = vpop.permute.xlu0 %464 }
 0x717   :  { %v467_v19 = vmul.f32 %v1294_v15, %v465_v18 }
 0x719   :  { %469 = vrot.lane.b32.xlu1 %v467_v19, %s1355_s3 }
 0x78b   :  { %v470_v21 = vpop.permute.xlu1 %469 }
 0x78c   :  { %v472_v22 = vadd.f32 %v470_v21, %v462_v20 }
 0x78e   :  { %1295 = vtanh.f32 %v472_v22 }
 0x798   :  { %v1296_v23 = vpop.eup %1295 }
 0x799   :  { %475 = vrot.lane.b32.xlu0 %v1296_v23, %s1354_s14  ;;  %v165_v23 = vadd.f32 %v1449_v14, %v1500_v1 }
 0x80b   :  { %v476_v24 = vpop.permute.xlu0 %475 }
 0x80c   :  { %v478_v25 = vmul.f32 %v1294_v15, %v476_v24 }
 0x80e   :  { %480 = vrot.lane.b32.xlu1 %v478_v25, %s1355_s3 }
 0x880   :  { %v481_v26 = vpop.permute.xlu1 %480 }
 0x881   :  { %1172 = vmatmul.mubr.msk.f32.vlgmr.msra.gmra.mrb[4].mxu1 %vm177_vm2, %v481_v26 }
 0x882   :  { %1254 = vmatpush3.bf16.msra.mxu1 %v1413_v8  ;;  %1193 = vmatprep.mubr.msk.f32.mxu1 %vm1352_vm1, %v1353_v11 }
 0x883   :  { %1255 = vmatprep.subr.bf16.mxu1 %v1351_v4 }
 0x886   :  { %1257 = vmatpush3.bf16.msra.mxu1 %v1428_v13 }
 0x887   :  { %1264 = vmatprep.subr.bf16.mxu1 %v1351_v4 }
 0x954   :  { %v550_v28 = vpop.f32.mrb[4].mxu1 }
 0x955   :  { %v554_v29 = vadd.f32 %v550_v28, %v150_v27  ;;  %v1173_v30 = vpop.f32.mrb[5].mxu1 }
 0x957   :  { %v1048_v31 = vmul.f32 -1.442695, %v554_v29 }
 0x959   :  { %1297 = vpow2.f32 %v1048_v31 }
 0x963   :  { %v1298_v32 = vpop.eup %1297 }
 0x964   :  { %v558_v33 = vadd.f32 1.0, %v1298_v32 }
 0x966   :  { %1299 = vrcp.f32 %v558_v33 }
 0x970   :  { %v1300_v34 = vpop.eup %1299 }
 0x971   :  { %v561_v35 = vmul.f32 2.0, %v1300_v34  ;;  %v563_v39 = vmul.f32 %v1300_v34, %v472_v22 }
 0x973   :  { %v1049_v36 = vadd.f32 -1.0, %v561_v35 }
 0x975   :  { %565 = vrot.lane.b32.xlu0 %v1049_v36, %s1354_s14 }
 0x9e7   :  { %v566_v37 = vpop.permute.xlu0 %565 }
 0x9e8   :  { %v568_v38 = vmul.f32 %v1300_v34, %v566_v37 }
 0x9ea   :  { %570 = vrot.lane.b32.xlu1 %v568_v38, %s1355_s3 }
 0xa5c   :  { %v571_v40 = vpop.permute.xlu1 %570 }
 0xa5d   :  { %v573_v41 = vadd.f32 %v571_v40, %v563_v39 }
 0xa5f   :  { %1301 = vtanh.f32 %v573_v41 }
 0xa69   :  { %v1302_v42 = vpop.eup %1301 }
 0xa6a   :  { %576 = vrot.lane.b32.xlu0 %v1302_v42, %s1354_s14 }
 0xadc   :  { %v577_v43 = vpop.permute.xlu0 %576 }
 0xadd   :  { %v579_v44 = vmul.f32 %v1300_v34, %v577_v43 }
 0xadf   :  { %581 = vrot.lane.b32.xlu1 %v579_v44, %s1355_s3 }
 0xb51   :  { %v582_v45 = vpop.permute.xlu1 %581 }
 0xb52   :  { %1183 = vmatmul.mubr.msk.f32.vlgmr.msra.gmra.mrb[10].mxu0 %vm177_vm2, %v582_v45 }
 0xb53   :  { %1260 = vmatpush3.bf16.msra.mxu0 %v1413_v8  ;;  %1204 = vmatprep.mubr.msk.f32.mxu0 %vm1352_vm1, %v1353_v11 }
 0xb54   :  { %1261 = vmatprep.subr.bf16.mxu0 %v1351_v4 }
 0xb57   :  { %1263 = vmatpush3.bf16.msra.mxu0 %v1428_v13 }
 0xc25   :  { %v651_v47 = vpop.f32.mrb[10].mxu0 }
 0xc26   :  { %v655_v48 = vadd.f32 %v651_v47, %v155_v46  ;;  %v1184_v49 = vpop.f32.mrb[11].mxu0 }
 0xc28   :  { %v1051_v50 = vmul.f32 -1.442695, %v655_v48 }
 0xc2a   :  { %1303 = vpow2.f32 %v1051_v50 }
 0xc34   :  { %v1304_v51 = vpop.eup %1303 }
 0xc35   :  { %v659_v52 = vadd.f32 1.0, %v1304_v51 }
 0xc37   :  { %1305 = vrcp.f32 %v659_v52 }
 0xc41   :  { %v1306_v53 = vpop.eup %1305 }
 0xc42   :  { %v662_v54 = vmul.f32 2.0, %v1306_v53  ;;  %v664_v58 = vmul.f32 %v1306_v53, %v573_v41  ;;  %v170_v41 = vadd.f32 %v1498_v0, %v1449_v14  ;;  %v1062_v14 = vld [vmem:[%s1584_s4] ss:$0 sm:$0xff]  ;;  %s1358_s4 = smov [#allocation3]  }
 0xc43   :  { %s1022_s29 = sshll.u32 %s1358_s4, 4  ;;  %s1023_s29 = int_to_ptr.vmem [resolvable:$true] %s1022_s29 }
 0xc44   :  { %v1052_v55 = vadd.f32 -1.0, %v662_v54  ;;  %s1327_s5 = scalar_lea.vmem %s1023_s29, 128  ;;  %p1332_p1 = scmp.lt.s32.totalorder %s1023_s29, %s1023_s29 }
 0xc45   :  { %p1328_p0 = scmp.ne.s32.totalorder %s1023_s29, %s1327_s5  ;;  %p1333_p2 = scmp.lt.s32.totalorder %s1327_s5, %s1327_s5 }
 0xc46   :  { %666 = vrot.lane.b32.xlu0 %v1052_v55, %s1354_s14 }
 0xc47   :  { %p1334_p3 = por %p1333_p2, %p1332_p1 }
 0xc49   :  { %p1335_p4 = pnand %p1334_p3, %p1328_p0 }
 0xcb8   :  { %v667_v56 = vpop.permute.xlu0 %666 }
 0xcb9   :  { %v669_v57 = vmul.f32 %v1306_v53, %v667_v56 }
 0xcbb   :  { %671 = vrot.lane.b32.xlu1 %v669_v57, %s1355_s3 }
 0xd2d   :  { %v672_v59 = vpop.permute.xlu1 %671 }
 0xd2e   :  { %v674_v60 = vadd.f32 %v672_v59, %v664_v58 }
 0xd30   :  { %1307 = vtanh.f32 %v674_v60 }
 0xd3a   :  { %v1308_v61 = vpop.eup %1307 }
 0xd3b   :  { %677 = vrot.lane.b32.xlu0 %v1308_v61, %s1354_s14 }
 0xdad   :  { %v678_v63 = vpop.permute.xlu0 %677 }
 0xdae   :  { %v680_v2 = vmul.f32 %v1306_v53, %v678_v63 }
 0xdb0   :  { %682 = vrot.lane.b32.xlu1 %v680_v2, %s1355_s3  ;;  %v1357_v2 = vmov 0  }
 0xdb1   :  { %1278 = vset.pattern.permute.xlu0 %v1357_v2 }
 0xe22   :  { %v683_v3 = vpop.permute.xlu1 %682 }
 0xe23   :  { %1194 = vmatmul.mubr.msk.f32.vlgmr.msra.gmra.mrb[6].mxu1 %vm177_vm2, %v683_v3  ;;  %v1063_v3 = vld [vmem:[#allocation2] ss:$0 sm:$0xff] }
 0xe24   :  { %1266 = vmatpush3.bf16.msra.mxu1 %v1413_v8  ;;  %1215 = vmatprep.mubr.msk.f32.mxu1 %vm1352_vm1, %v1353_v11 }
 0xe25   :  { %1267 = vmatprep.subr.bf16.mxu1 %v1351_v4 }
 0xe28   :  { %1269 = vmatpush3.bf16.msra.mxu1 %v1428_v13 }
 0xef6   :  { %v752_v6 = vpop.f32.mrb[6].mxu1 }
 0xef7   :  { %v756_v7 = vadd.f32 %v752_v6, %v160_v5  ;;  %v1195_v9 = vpop.f32.mrb[7].mxu1 }
 0xef9   :  { %v1054_v10 = vmul.f32 -1.442695, %v756_v7 }
 0xefb   :  { %1309 = vpow2.f32 %v1054_v10 }
 0xf05   :  { %v1310_v12 = vpop.eup %1309 }
 0xf06   :  { %v760_v15 = vadd.f32 1.0, %v1310_v12 }
 0xf08   :  { %1311 = vrcp.f32 %v760_v15 }
 0xf12   :  { %v1312_v16 = vpop.eup %1311 }
 0xf13   :  { %v763_v8 = vmul.f32 2.0, %v1312_v16  ;;  %v765_v13 = vmul.f32 %v1312_v16, %v674_v60 }
 0xf15   :  { %v1055_v17 = vadd.f32 -1.0, %v763_v8 }
 0xf17   :  { %767 = vrot.lane.b32.xlu0 %v1055_v17, %s1354_s14 }
 0xf89   :  { %v768_v11 = vpop.permute.xlu0 %767 }
 0xf8a   :  { %v770_v4 = vmul.f32 %v1312_v16, %v768_v11 }
 0xf8c   :  { %772 = vrot.lane.b32.xlu1 %v770_v4, %s1355_s3 }
 0xffe   :  { %v773_v18 = vpop.permute.xlu1 %772 }
 0xfff   :  { %v775_v62 = vadd.f32 %v773_v18, %v765_v13 }
0x1001   :  { %1313 = vtanh.f32 %v775_v62 }
0x100b   :  { %v1314_v19 = vpop.eup %1313 }
0x100c   :  { %778 = vrot.lane.b32.xlu0 %v1314_v19, %s1354_s14 }
0x107e   :  { %v779_v20 = vpop.permute.xlu0 %778 }
0x107f   :  { %v781_v21 = vmul.f32 %v1312_v16, %v779_v20 }
0x1081   :  { %783 = vrot.lane.b32.xlu1 %v781_v21, %s1355_s3 }
0x10f3   :  { %v784_v22 = vpop.permute.xlu1 %783 }
0x10f4   :  { %1205 = vmatmul.mubr.msk.f32.vlgmr.msra.gmra.mrb[12].mxu0 %vm177_vm2, %v784_v22 }
0x11c7   :  { %v853_v24 = vpop.f32.mrb[12].mxu0 }
0x11c8   :  { %v857_v25 = vadd.f32 %v853_v24, %v165_v23  ;;  %v1206_v26 = vpop.f32.mrb[13].mxu0 }
0x11ca   :  { %v1057_v27 = vmul.f32 -1.442695, %v857_v25 }
0x11cc   :  { %1315 = vpow2.f32 %v1057_v27 }
0x11d6   :  { %v1316_v28 = vpop.eup %1315 }
0x11d7   :  { %v861_v29 = vadd.f32 1.0, %v1316_v28 }
0x11d9   :  { %1317 = vrcp.f32 %v861_v29 }
0x11e3   :  { %v1318_v30 = vpop.eup %1317 }
0x11e4   :  { %v864_v31 = vmul.f32 2.0, %v1318_v30  ;;  %v866_v35 = vmul.f32 %v1318_v30, %v775_v62 }
0x11e6   :  { %v1058_v32 = vadd.f32 -1.0, %v864_v31 }
0x11e8   :  { %868 = vrot.lane.b32.xlu0 %v1058_v32, %s1354_s14 }
0x125a   :  { %v869_v33 = vpop.permute.xlu0 %868 }
0x125b   :  { %v871_v34 = vmul.f32 %v1318_v30, %v869_v33 }
0x125d   :  { %873 = vrot.lane.b32.xlu1 %v871_v34, %s1355_s3 }
0x12cf   :  { %v874_v36 = vpop.permute.xlu1 %873 }
0x12d0   :  { %v876_v1 = vadd.f32 %v874_v36, %v866_v35 }
0x12d2   :  { %1319 = vtanh.f32 %v876_v1 }
0x12dc   :  { %v1320_v37 = vpop.eup %1319 }
0x12dd   :  { %879 = vrot.lane.b32.xlu0 %v1320_v37, %s1354_s14 }
0x134f   :  { %v880_v38 = vpop.permute.xlu0 %879 }
0x1350   :  { %v882_v39 = vmul.f32 %v1318_v30, %v880_v38 }
0x1352   :  { %884 = vrot.lane.b32.xlu1 %v882_v39, %s1355_s3 }
0x13c4   :  { %v885_v40 = vpop.permute.xlu1 %884 }
0x13c5   :  { %1216 = vmatmul.mubr.msk.f32.vlgmr.msra.gmra.mrb[8].mxu1 %vm177_vm2, %v885_v40 }
0x1498   :  { %v954_v42 = vpop.f32.mrb[8].mxu1 }
0x1499   :  { %v958_v43 = vadd.f32 %v954_v42, %v170_v41  ;;  %v1217_v44 = vpop.f32.mrb[9].mxu1 }
0x149b   :  { %v1060_v45 = vmul.f32 -1.442695, %v958_v43 }
0x149d   :  { %1321 = vpow2.f32 %v1060_v45 }
0x14a7   :  { %v1322_v46 = vpop.eup %1321 }
0x14a8   :  { %v962_v47 = vadd.f32 1.0, %v1322_v46 }
0x14aa   :  { %1323 = vrcp.f32 %v962_v47 }
0x14b4   :  { %v1324_v48 = vpop.eup %1323 }
0x14b5   :  { %v965_v49 = vmul.f32 2.0, %v1324_v48  ;;  %v967_v0 = vmul.f32 %v1324_v48, %v876_v1 }
0x14b7   :  { %v1061_v50 = vadd.f32 -1.0, %v965_v49 }
0x14b9   :  { %969 = vrot.lane.b32.xlu0 %v1061_v50, %s1354_s14 }
0x152b   :  { %v970_v51 = vpop.permute.xlu0 %969 }
0x152c   :  { %v972_v52 = vmul.f32 %v1324_v48, %v970_v51 }
0x152e   :  { %974 = vrot.lane.b32.xlu1 %v972_v52, %s1355_s3 }
0x1532   :  { %991 = vrot.lane.b32.xlu1 %v1062_v14, %s1356_s28 }
0x15a0   :  { %v975_v53 = vpop.permute.xlu1 %974 }
0x15a1   :  { %v977_v54 = vadd.f32 %v975_v53, %v967_v0 }
0x15a3   :  { %1325 = vtanh.f32 %v977_v54 }
0x15a4   :  { %v992_v58 = vpop.permute.xlu1 %991 }
0x15ad   :  { %v1326_v55 = vpop.eup %1325 }
0x15ae   :  { %980 = vrot.lane.b32.xlu0 %v1326_v55, %s1354_s14 }
0x1620   :  { %v981_v56 = vpop.permute.xlu0 %980 }
0x1621   :  { %v983_v57 = vmul.f32 %v1324_v48, %v981_v56 }
0x1623   :  { %v984_v59 = vmax.f32 %v983_v57, 0.0 }
0x1625   :  { %v994_v60 = vmul.f32 %v992_v58, %v984_v59 }
0x1627   :  { %996 = vrot.lane.b32.xlu0 %v994_v60, %s1355_s3 }
0x1699   :  { %v997_v61 = vpop.permute.xlu0 %996 }
0x169a   :  { %v999_v63 = vsel %vm177_vm2, %v997_v61, 0.0 }
0x169b   :  { %1000 = vadd.xlane.f32.xlu1 %v999_v63 }
0x1728   :  { %v1001_v5 = vpop.xlane.xlu1 %1000 }
0x1729   :  { %v1009_v6 = vadd.f32 %v1063_v3, %v1001_v5 }
0x172b   :  { %1012 = vperm.xlu0 %1278, %v1009_v6  }
0x17aa   :  { %v1013_v7 = vpop.permute.xlu0 %1012 }
0x17ab   :  { %1015 = vst [vmem:[#allocation3] sm:$0xff] %v1013_v7 }
0x17ac   :  { %1338 = shalt.err (!%p1335_p4)
}
0x17ad   :  { %s1339_s1 = scalar_lea.hbm %s1586_s6, 128 }
0x17ae   :  { %p1340_p5 = scmp.ne.s32.totalorder %s1586_s6, %s1339_s1  ;;  %p1343_p6 = scmp.lt.u32.totalorder %s1339_s1, %s1586_s6 }
0x17b0   :  { %p1345_p7 = pnand %p1343_p6, %p1340_p5 }
0x17b2   :  { %1348 = shalt.err (!%p1345_p7)
}
0x17b3   :  { %1025 = dma.vmem_to_hbm [thread:$0]  %s1023_s29, 128, %s1586_s6, [#allocation4]  }
0x17b4   :  { %1349 = dma.done.wait [#allocation4], 128  }
0x17b5   :  { %1350 = vsyncadd [#allocation4], 4294967168 }
0x17b6   :  { %1029 = vsyncpa [#allocation4], 1 }

</bundles_post_ra>
